<compile_context>
chip_gen: v6e
topology: v6e:2x2x1
jax: 0.10.0
libtpu: 0.0.40
codegen_flags: <defaults>
</compile_context>

<pallas_src>
import numpy as np
import jax
import jax.numpy as jnp
from jax.experimental import pallas as pl
from jax.experimental.pallas import tpu as pltpu

INPUT_DIM = 512
HIDDEN_DIM = 128
ACTION_DIM = 4
OUT_LANES = 128          # packed, lane-dense output width
TILE_B = 8               # batch tile (sublane multiple)
BIAS_ROWS = 8            # bias pack rows (min sublane tile)

LOGIT_LO, LOGIT_HI = 0, ACTION_DIM                 # lanes 0-3 : logits
PROB_LO, PROB_HI = ACTION_DIM, 2 * ACTION_DIM      # lanes 4-7 : probs
VALUE_LANE = 2 * ACTION_DIM                        # lane  8   : value


# ----------------------------------------------------------------------------
# text -> 512-bit binary tensor (faithful port of text_to_binary/text_to_tensor)
# ----------------------------------------------------------------------------
def text_to_binary(text: str) -> str:
    return " ".join(format(ord(ch), "08b") for ch in text)


def text_to_tensor(text: str) -> jnp.ndarray:
    binary = text_to_binary(text).replace(" ", "")
    array = [int(b) for b in binary]
    while len(array) < INPUT_DIM:
        array.append(0)
    array = array[:INPUT_DIM]
    return jnp.asarray(np.asarray(array, dtype=np.float32)[None, :])  # [1, 512]


# ----------------------------------------------------------------------------
# Pallas kernel: fused ALMAPolicy forward + softmax, packed lane-dense output
# ----------------------------------------------------------------------------
def alma_policy_kernel(
    x_ref,      # [TILE_B, 512]
    w1_ref,     # [512, 128]
    w2h_ref,    # [256, 128]   rows 0:128 = W2, rows 128:256 = fused heads
    b_ref,      # [8, 128]     row 0 = b1, row 1 = b2, row 2 = fused head bias
    out_ref,    # [TILE_B, 128] lanes 0-3 logits, 4-7 probs, 8 value, rest 0
):
    x = x_ref[...]
    b1 = b_ref[0:1, :]
    b2 = b_ref[1:2, :]
    bh = b_ref[2:3, :]

    # fc1 + ReLU
    h1 = jnp.dot(x, w1_ref[...], preferred_element_type=jnp.float32) + b1
    h1 = jnp.maximum(h1, 0.0)

    # fc2 + ReLU  (static sublane-aligned slice of the stacked weight)
    h2 = jnp.dot(h1, w2h_ref[0:HIDDEN_DIM, :],
                 preferred_element_type=jnp.float32) + b2
    h2 = jnp.maximum(h2, 0.0)

    # fused heads: one lane-dense [TILE_B,128] MXU pass
    head = jnp.dot(h2, w2h_ref[HIDDEN_DIM:2 * HIDDEN_DIM, :],
                   preferred_element_type=jnp.float32) + bh
    # head lanes: 0-3 logits, 4-7 logits (copy), 8 value, 9-127 exactly 0

    # numerically stable masked softmax on the duplicated-logit lanes 4-7;
    # the unbounded value lane is masked to -inf BEFORE the exp.
    lane = jax.lax.broadcasted_iota(jnp.int32, head.shape, dimension=1)
    prob_lanes = jnp.logical_and(lane >= PROB_LO, lane < PROB_HI)
    safe = jnp.where(prob_lanes, head, -jnp.inf)
    m = jnp.max(safe, axis=-1, keepdims=True)
    e = jnp.exp(safe - m)                       # non-prob lanes -> exp(-inf) = 0
    denom = jnp.sum(e, axis=-1, keepdims=True)
    probs = e / denom                           # only 4 live lanes; plain divide

    # lanes 4-7 become probs; logits / value / zero pad pass through
    out_ref[...] = jnp.where(prob_lanes, probs, head)


# ----------------------------------------------------------------------------
# One fused device program: pad -> pallas_call -> slice slab -> sample action
# ----------------------------------------------------------------------------
def _alma_step_impl(x, w1, w2h, b_pack, key):
    B = x.shape[0]
    Bp = ((B + TILE_B - 1) // TILE_B) * TILE_B
    xp = x if Bp == B else jnp.pad(x, ((0, Bp - B), (0, 0)))

    packed = pl.pallas_call(
        alma_policy_kernel,
        out_shape=jax.ShapeDtypeStruct((Bp, OUT_LANES), jnp.float32),
        grid_spec=pltpu.PrefetchScalarGridSpec(
            num_scalar_prefetch=0,
            grid=(Bp // TILE_B,),
            in_specs=[
                pl.BlockSpec((TILE_B, INPUT_DIM), lambda i: (i, 0)),
                # weights/biases: same block for every grid step -> VMEM-resident
                pl.BlockSpec((INPUT_DIM, HIDDEN_DIM), lambda i: (0, 0)),
                pl.BlockSpec((2 * HIDDEN_DIM, OUT_LANES), lambda i: (0, 0)),
                pl.BlockSpec((BIAS_ROWS, OUT_LANES), lambda i: (0, 0)),
            ],
            out_specs=pl.BlockSpec((TILE_B, OUT_LANES), lambda i: (i, 0)),
        ),
        compiler_params=pltpu.CompilerParams(
            dimension_semantics=("parallel",)),     # batch axis -> both TCs on v7x
    )(xp, w1, w2h, b_pack)

    logits = packed[:B, LOGIT_LO:LOGIT_HI]
    probs = packed[:B, PROB_LO:PROB_HI]
    value = packed[:B, VALUE_LANE:VALUE_LANE + 1]
    # multinomial(probs, 1): sample from logits directly, inside the same program
    action = jax.random.categorical(key, logits, axis=-1)
    return probs, logits, value, action


alma_step = jax.jit(_alma_step_impl)


# ----------------------------------------------------------------------------
# Deterministic parameter init (mimics nn.Linear default: U(-1/sqrt(fan_in), ..))
# Weights stored as [in, out]; heads fused lane-dense; operands consolidated.
# ----------------------------------------------------------------------------
def init_params(key):
    def linear(key, fan_in, fan_out):
        k1, k2 = jax.random.split(key)
        bound = 1.0 / np.sqrt(fan_in)
        w = jax.random.uniform(k1, (fan_in, fan_out), jnp.float32, -bound, bound)
        b = jax.random.uniform(k2, (1, fan_out), jnp.float32, -bound, bound)
        return w, b

    k1, k2, k3, k4 = jax.random.split(key, 4)
    w1, b1 = linear(k1, INPUT_DIM, HIDDEN_DIM)
    w2, b2 = linear(k2, HIDDEN_DIM, HIDDEN_DIM)
    wa, ba = linear(k3, HIDDEN_DIM, ACTION_DIM)
    wv, bv = linear(k4, HIDDEN_DIM, 1)

    # Fused heads: cols 0-3 = wa (logits), cols 4-7 = wa (softmax copy), col 8 = wv.
    w_heads = jnp.zeros((HIDDEN_DIM, OUT_LANES), jnp.float32)
    w_heads = w_heads.at[:, LOGIT_LO:LOGIT_HI].set(wa)
    w_heads = w_heads.at[:, PROB_LO:PROB_HI].set(wa)
    w_heads = w_heads.at[:, VALUE_LANE:VALUE_LANE + 1].set(wv)
    b_heads = jnp.zeros((1, OUT_LANES), jnp.float32)
    b_heads = b_heads.at[:, LOGIT_LO:LOGIT_HI].set(ba)
    b_heads = b_heads.at[:, PROB_LO:PROB_HI].set(ba)
    b_heads = b_heads.at[:, VALUE_LANE:VALUE_LANE + 1].set(bv)

    # Consolidated operands (fewer DMA descriptors):
    w2h = jnp.concatenate([w2, w_heads], axis=0)                 # [256, 128]
    b_pack = jnp.zeros((BIAS_ROWS, OUT_LANES), jnp.float32)      # [8, 128]
    b_pack = b_pack.at[0:1, :].set(b1)
    b_pack = b_pack.at[1:2, :].set(b2)
    b_pack = b_pack.at[2:3, :].set(b_heads)

    return dict(
        w1=w1, w2h=w2h, b=b_pack,
        # raw (unpacked) params kept only for the reference cross-check
        raw=dict(w1=w1, b1=b1, w2=w2, b2=b2, wa=wa, ba=ba, wv=wv, bv=bv),
    )


# ----------------------------------------------------------------------------
# ALMA.forward equivalent (neural part), single query.
# TODO(synk): SemanticMemory / Emotion / Curiosity / EpisodicMemory and the
# natural-language response generation are pure-Python symbolic state with no
# tensor compute — not translatable to a Pallas kernel.
# ----------------------------------------------------------------------------
def alma_forward(input_text, params, sample_key):
    x = text_to_tensor(input_text)                        # [1, 512]
    return alma_step(x, params["w1"], params["w2h"], params["b"], sample_key)


if __name__ == "__main__":
    key = jax.random.PRNGKey(0)
    pkey, skey1, skey2 = jax.random.split(key, 3)
    params = init_params(pkey)

    # Batched path: several queries in ONE fused device program.
    texts = [
        "ola alice estou feliz hoje",
        "hoje estou um pouco triste",
        "o que voce lembra de mim",
        "quem e voce alice",
    ]
    x = jnp.concatenate([text_to_tensor(t) for t in texts], axis=0)   # [4, 512]
    probs, logits, value, action = alma_step(
        x, params["w1"], params["w2h"], params["b"], skey1)
    jax.block_until_ready((probs, logits, value, action))

    B = x.shape[0]
    assert probs.shape == (B, ACTION_DIM)
    assert logits.shape == (B, ACTION_DIM)
    assert value.shape == (B, 1)
    assert action.shape == (B,)
    np.testing.assert_allclose(
        np.asarray(jnp.sum(probs, axis=-1)), np.ones(B), rtol=1e-5, atol=1e-5)

    # Single-query ALMA.forward-equivalent path (pads 1 -> 8 rows internally).
    p1, l1, v1, a1 = alma_forward(texts[0], params, skey2)
    jax.block_until_ready((p1, l1, v1, a1))
    assert p1.shape == (1, ACTION_DIM) and v1.shape == (1, 1) and a1.shape == (1,)

    # Cross-check the kernel against a plain-JAX reference (original head layout).
    raw = params["raw"]
    h1 = jnp.maximum(x @ raw["w1"] + raw["b1"], 0.0)
    h2 = jnp.maximum(h1 @ raw["w2"] + raw["b2"], 0.0)
    ref_logits = h2 @ raw["wa"] + raw["ba"]
    ref_value = h2 @ raw["wv"] + raw["bv"]
    ref_probs = jax.nn.softmax(ref_logits, axis=-1)
    np.testing.assert_allclose(np.asarray(logits), np.asarray(ref_logits), rtol=1e-5, atol=1e-5)
    np.testing.assert_allclose(np.asarray(value), np.asarray(ref_value), rtol=1e-5, atol=1e-5)
    np.testing.assert_allclose(np.asarray(probs), np.asarray(ref_probs), rtol=1e-5, atol=1e-5)
    np.testing.assert_allclose(np.asarray(l1), np.asarray(ref_logits[:1]), rtol=1e-5, atol=1e-5)
    np.testing.assert_allclose(np.asarray(v1), np.asarray(ref_value[:1]), rtol=1e-5, atol=1e-5)

    print("KERNEL_OK")
</pallas_src>

<mosaic_0001>
module attributes {stable_mosaic.version = 11 : i64} {
  func.func @alma_policy_kernel(%arg0: i32, %arg1: memref<8x512xf32, #tpu.memory_space<vmem>>, %arg2: memref<512x128xf32, #tpu.memory_space<vmem>>, %arg3: memref<256x128xf32, #tpu.memory_space<vmem>>, %arg4: memref<8x128xf32, #tpu.memory_space<vmem>>, %arg5: memref<8x128xf32, #tpu.memory_space<vmem>>) attributes {dimension_semantics = [#tpu.dimension_semantics<parallel>], iteration_bounds = array<i64: 1>, scalar_prefetch = 0 : i64, scratch_operands = 0 : i64, tpu.core_type = #tpu.core_type<tc>, window_params = [{transform_indices = @transform_0, window_bounds = array<i64: 8, 512>}, {pipeline_mode = #tpu.pipeline_mode<synchronous>, transform_indices = @transform_1, window_bounds = array<i64: 512, 128>}, {pipeline_mode = #tpu.pipeline_mode<synchronous>, transform_indices = @transform_2, window_bounds = array<i64: 256, 128>}, {pipeline_mode = #tpu.pipeline_mode<synchronous>, transform_indices = @transform_3, window_bounds = array<i64: 8, 128>}, {transform_indices = @transform_4, window_bounds = array<i64: 8, 128>}]} {
    %c0 = arith.constant 0 : index
    %c0_0 = arith.constant 0 : index
    %0 = vector.load %arg1[%c0, %c0_0] : memref<8x512xf32, #tpu.memory_space<vmem>>, vector<8x512xf32>
    %c0_1 = arith.constant 0 : index
    %c0_2 = arith.constant 0 : index
    %1 = vector.load %arg4[%c0_1, %c0_2] : memref<8x128xf32, #tpu.memory_space<vmem>>, vector<1x128xf32>
    %c1 = arith.constant 1 : index
    %c0_3 = arith.constant 0 : index
    %2 = vector.load %arg4[%c1, %c0_3] : memref<8x128xf32, #tpu.memory_space<vmem>>, vector<1x128xf32>
    %c2 = arith.constant 2 : index
    %c0_4 = arith.constant 0 : index
    %3 = vector.load %arg4[%c2, %c0_4] : memref<8x128xf32, #tpu.memory_space<vmem>>, vector<1x128xf32>
    %c0_5 = arith.constant 0 : index
    %c0_6 = arith.constant 0 : index
    %4 = vector.load %arg2[%c0_5, %c0_6] : memref<512x128xf32, #tpu.memory_space<vmem>>, vector<512x128xf32>
    %cst = arith.constant dense<0.000000e+00> : vector<8x128xf32>
    %5 = tpu.matmul %0, %4, %cst {dimension_numbers = #tpu.dot_dimension_numbers<[1], [0], [0], [1], [0, 0, 1, 1], [], []>} : vector<8x512xf32>, vector<512x128xf32>, vector<8x128xf32> -> vector<8x128xf32>
    %6 = vector.broadcast %1 : vector<1x128xf32> to vector<8x128xf32>
    %7 = arith.addf %5, %6 : vector<8x128xf32>
    %cst_7 = arith.constant 0.000000e+00 : f32
    %8 = vector.broadcast %cst_7 : f32 to vector<8x128xf32>
    %9 = arith.maximumf %7, %8 : vector<8x128xf32>
    %c0_8 = arith.constant 0 : index
    %c0_9 = arith.constant 0 : index
    %10 = vector.load %arg3[%c0_8, %c0_9] : memref<256x128xf32, #tpu.memory_space<vmem>>, vector<128x128xf32>
    %cst_10 = arith.constant dense<0.000000e+00> : vector<8x128xf32>
    %11 = tpu.matmul %9, %10, %cst_10 {dimension_numbers = #tpu.dot_dimension_numbers<[1], [0], [0], [1], [0, 0, 1, 1], [], []>} : vector<8x128xf32>, vector<128x128xf32>, vector<8x128xf32> -> vector<8x128xf32>
    %12 = vector.broadcast %2 : vector<1x128xf32> to vector<8x128xf32>
    %13 = arith.addf %11, %12 : vector<8x128xf32>
    %cst_11 = arith.constant 0.000000e+00 : f32
    %14 = vector.broadcast %cst_11 : f32 to vector<8x128xf32>
    %15 = arith.maximumf %13, %14 : vector<8x128xf32>
    %c128 = arith.constant 128 : index
    %c0_12 = arith.constant 0 : index
    %16 = vector.load %arg3[%c128, %c0_12] : memref<256x128xf32, #tpu.memory_space<vmem>>, vector<128x128xf32>
    %cst_13 = arith.constant dense<0.000000e+00> : vector<8x128xf32>
    %17 = tpu.matmul %15, %16, %cst_13 {dimension_numbers = #tpu.dot_dimension_numbers<[1], [0], [0], [1], [0, 0, 1, 1], [], []>} : vector<8x128xf32>, vector<128x128xf32>, vector<8x128xf32> -> vector<8x128xf32>
    %18 = vector.broadcast %3 : vector<1x128xf32> to vector<8x128xf32>
    %19 = arith.addf %17, %18 : vector<8x128xf32>
    %20 = tpu.iota {dimensions = array<i32: 1>} : vector<8x128xi32>
    %c4_i32 = arith.constant 4 : i32
    %21 = vector.broadcast %c4_i32 : i32 to vector<8x128xi32>
    %22 = arith.cmpi sge, %20, %21 : vector<8x128xi32>
    %c8_i32 = arith.constant 8 : i32
    %23 = vector.broadcast %c8_i32 : i32 to vector<8x128xi32>
    %24 = arith.cmpi slt, %20, %23 : vector<8x128xi32>
    %25 = arith.andi %22, %24 : vector<8x128xi1>
    %cst_14 = arith.constant 0xFF800000 : f32
    %26 = vector.broadcast %cst_14 : f32 to vector<8x128xf32>
    %27 = arith.select %25, %19, %26 : vector<8x128xi1>, vector<8x128xf32>
    %cst_15 = arith.constant dense<0xFF800000> : vector<8xf32>
    %28 = vector.multi_reduction <maximumf>, %27, %cst_15 [1] : vector<8x128xf32> to vector<8xf32>
    %29 = vector.shape_cast %28 : vector<8xf32> to vector<8x1xf32>
    %30 = vector.broadcast %29 : vector<8x1xf32> to vector<8x128xf32>
    %31 = arith.subf %27, %30 : vector<8x128xf32>
    %32 = math.exp %31 : vector<8x128xf32>
    %cst_16 = arith.constant dense<0.000000e+00> : vector<8xf32>
    %33 = vector.multi_reduction <add>, %32, %cst_16 [1] : vector<8x128xf32> to vector<8xf32>
    %34 = vector.shape_cast %33 : vector<8xf32> to vector<8x1xf32>
    %35 = vector.broadcast %34 : vector<8x1xf32> to vector<8x128xf32>
    %36 = arith.divf %32, %35 : vector<8x128xf32>
    %37 = arith.select %25, %36, %19 : vector<8x128xi1>, vector<8x128xf32>
    %c0_17 = arith.constant 0 : index
    %c0_18 = arith.constant 0 : index
    %38 = vector.load %arg5[%c0_17, %c0_18] : memref<8x128xf32, #tpu.memory_space<vmem>>, vector<8x128xf32>
    tpu.vector_store %arg5[%c0_17, %c0_18], %37 {strides = array<i32>} : memref<8x128xf32, #tpu.memory_space<vmem>>, vector<8x128xf32>,
    return
  }
  func.func @transform_0(%arg0: i32) -> (i32, i32) {
    %c0_i32 = arith.constant 0 : i32
    %c0_i32_0 = arith.constant 0 : i32
    return %arg0, %c0_i32 : i32, i32
  }
  func.func @transform_1(%arg0: i32) -> (i32, i32) {
    %c0_i32 = arith.constant 0 : i32
    %c0_i32_0 = arith.constant 0 : i32
    %c0_i32_1 = arith.constant 0 : i32
    return %c0_i32, %c0_i32_0 : i32, i32
  }
  func.func @transform_2(%arg0: i32) -> (i32, i32) {
    %c0_i32 = arith.constant 0 : i32
    %c0_i32_0 = arith.constant 0 : i32
    %c0_i32_1 = arith.constant 0 : i32
    return %c0_i32, %c0_i32_0 : i32, i32
  }
  func.func @transform_3(%arg0: i32) -> (i32, i32) {
    %c0_i32 = arith.constant 0 : i32
    %c0_i32_0 = arith.constant 0 : i32
    %c0_i32_1 = arith.constant 0 : i32
    return %c0_i32, %c0_i32_0 : i32, i32
  }
  func.func @transform_4(%arg0: i32) -> (i32, i32) {
    %c0_i32 = arith.constant 0 : i32
    %c0_i32_0 = arith.constant 0 : i32
    return %arg0, %c0_i32 : i32, i32
  }
}

</mosaic_0001>

<bundles_post_ra>
// kernel: _alma_step_impl.1
= control target key start
LH: loop header
LB: loop body
LE: loop exit
PB: predicated region body
PF: predicated region fallthrough
CT: control target
= control target key end

     0   :  { %9 = vsyncpa [#allocation3], 0  ;;  %s799_s0 = inlined_call_operand.vmem [shape: f32[8,512], index: 0, kind: input, shape index: {}]   ;;  %s800_s1 = inlined_call_operand.hbm [shape: f32[512,128], index: 1, kind: input, shape index: {}]   ;;  %s801_s2 = inlined_call_operand.hbm [shape: f32[256,128], index: 2, kind: input, shape index: {}]   ;;  %s802_s3 = inlined_call_operand.vmem [shape: f32[8,128], index: 3, kind: input, shape index: {}]   ;;  %s803_s4 = inlined_call_operand.vmem [shape: f32[8,128], index: 4, kind: output, shape index: {}]  }
   0x1   :  { %10 = vsyncpa [#allocation5], 0  ;;  %s696_s15 = smov [#allocation2]  }
   0x2   :  { %s18_s16 = sshll.u32 %s696_s15, 4  ;;  %s19_s16 = int_to_ptr.vmem [resolvable:$true] %s18_s16 }
   0x3   :  { %s660_s17 = scalar_lea.vmem %s19_s16, 8192  ;;  %p665_p1 = scmp.lt.s32.totalorder %s19_s16, %s19_s16 }
   0x4   :  { %p661_p0 = scmp.ne.s32.totalorder %s19_s16, %s660_s17  ;;  %p666_p2 = scmp.lt.s32.totalorder %s660_s17, %s660_s17 }
   0x6   :  { %p667_p3 = por %p666_p2, %p665_p1 }
   0x8   :  { %p668_p4 = pnand %p667_p3, %p661_p0 }
   0xa   :  { %671 = shalt.err (!%p668_p4)
}
   0xb   :  { %s697_s18 = smov 128   ;;  %s698_s19 = smov 8  }
   0xc   :  { %24 = dma.hbm_to_vmem [thread:$0]  %s800_s1, 8192, %s19_s16, [#allocation3], %s697_s18, %s697_s18, %s698_s19  }
   0xd   :  { %s699_s22 = smov [#allocation4]  }
   0xe   :  { %s30_s23 = sshll.u32 %s699_s22, 4  ;;  %s31_s23 = int_to_ptr.vmem [resolvable:$true] %s30_s23 }
   0xf   :  { %s680_s24 = scalar_lea.vmem %s31_s23, 4096  ;;  %p685_p6 = scmp.lt.s32.totalorder %s31_s23, %s31_s23 }
  0x10   :  { %p681_p5 = scmp.ne.s32.totalorder %s31_s23, %s680_s24  ;;  %p686_p7 = scmp.lt.s32.totalorder %s680_s24, %s680_s24 }
  0x12   :  { %p687_p8 = por %p686_p7, %p685_p6 }
  0x14   :  { %p688_p9 = pnand %p687_p8, %p681_p5 }
  0x16   :  { %691 = shalt.err (!%p688_p9)
}
  0x17   :  { %36 = dma.hbm_to_vmem [thread:$0]  %s801_s2, 4096, %s31_s23, [#allocation5], %s697_s18, %s697_s18, %s698_s19  }
  0x18   :  { %692 = dma.done.wait [#allocation3], 8192  }
  0x19   :  { %693 = vsyncadd [#allocation3], 4294959104 }
  0x1a   :  { %694 = dma.done.wait [#allocation5], 4096  }
  0x1b   :  { %695 = vsyncadd [#allocation5], 4294963200  ;;  %v83_v0 = vld [vmem:[#allocation2 + $0xf8] sm:$0xff]  ;;  %v82_v4 = vld [vmem:[#allocation2 + $0xf0] sm:$0xff]  ;;  %vm701_vm0 = vmmov 0  }
  0x1c   :  { %v115_v1 = vld [vmem:[#allocation2 + $0x1f8] sm:$0xff]  ;;  %468 = vmatprep.subr.mxu0 %v83_v0  ;;  %v114_v5 = vld [vmem:[#allocation2 + $0x1f0] sm:$0xff]  ;;  %v81_v8 = vld [vmem:[#allocation2 + $0xe8] sm:$0xff] }
  0x1d   :  { %v67_v2 = vld [vmem:[#allocation2 + $0x78] sm:$0xff]  ;;  %503 = vmatprep.subr.mxu1 %v115_v1  ;;  %v66_v6 = vld [vmem:[#allocation2 + $0x70] sm:$0xff]  ;;  %v113_v9 = vld [vmem:[#allocation2 + $0x1e8] sm:$0xff] }
  0x1e   :  { %v99_v3 = vld [vmem:[#allocation2 + $0x178] sm:$0xff]  ;;  %469 = vmatpush3.msra.mxu0 %v67_v2  ;;  %v98_v7 = vld [vmem:[#allocation2 + $0x170] sm:$0xff]  ;;  %v65_v10 = vld [vmem:[#allocation2 + $0x68] sm:$0xff] }
  0x1f   :  { %504 = vmatpush3.msra.mxu1 %v99_v3  ;;  %470 = vmatprep.subr.mxu0 %v82_v4  ;;  %v97_v11 = vld [vmem:[#allocation2 + $0x168] sm:$0xff]  ;;  %v80_v12 = vld [vmem:[#allocation2 + $0xe0] sm:$0xff]  ;;  %v79_v16 = vld [vmem:[#allocation2 + $0xd8] sm:$0xff] }
  0x20   :  { %505 = vmatprep.subr.mxu1 %v114_v5  ;;  %471 = vmatpush3.msra.mxu0 %v66_v6  ;;  %v112_v13 = vld [vmem:[#allocation2 + $0x1e0] sm:$0xff]  ;;  %v111_v17 = vld [vmem:[#allocation2 + $0x1d8] sm:$0xff]  ;;  %v78_v20 = vld [vmem:[#allocation2 + $0xd0] sm:$0xff]  ;;  %v700_v5 = vmov 0.0  }
  0x21   :  { %506 = vmatpush3.msra.mxu1 %v98_v7  ;;  %472 = vmatprep.subr.mxu0 %v81_v8  ;;  %v64_v14 = vld [vmem:[#allocation2 + $0x60] sm:$0xff]  ;;  %v63_v18 = vld [vmem:[#allocation2 + $0x58] sm:$0xff]  ;;  %v110_v21 = vld [vmem:[#allocation2 + $0x1d0] sm:$0xff] }
  0x22   :  { %507 = vmatprep.subr.mxu1 %v113_v9  ;;  %v96_v15 = vld [vmem:[#allocation2 + $0x160] sm:$0xff]  ;;  %473 = vmatpush3.msra.mxu0 %v65_v10  ;;  %v95_v19 = vld [vmem:[#allocation2 + $0x158] sm:$0xff]  ;;  %v62_v22 = vld [vmem:[#allocation2 + $0x50] sm:$0xff] }
  0x23   :  { %508 = vmatpush3.msra.mxu1 %v97_v11  ;;  %474 = vmatprep.subr.mxu0 %v80_v12  ;;  %v94_v23 = vld [vmem:[#allocation2 + $0x150] sm:$0xff]  ;;  %v77_v24 = vld [vmem:[#allocation2 + $0xc8] sm:$0xff]  ;;  %v76_v28 = vld [vmem:[#allocation2 + $0xc0] sm:$0xff] }
  0x24   :  { %509 = vmatprep.subr.mxu1 %v112_v13  ;;  %475 = vmatpush3.msra.mxu0 %v64_v14  ;;  %v109_v25 = vld [vmem:[#allocation2 + $0x1c8] sm:$0xff]  ;;  %v108_v29 = vld [vmem:[#allocation2 + $0x1c0] sm:$0xff]  ;;  %v75_v32 = vld [vmem:[#allocation2 + $0xb8] sm:$0xff] }
  0x25   :  { %510 = vmatpush3.msra.mxu1 %v96_v15  ;;  %476 = vmatprep.subr.mxu0 %v79_v16  ;;  %v61_v26 = vld [vmem:[#allocation2 + $0x48] sm:$0xff]  ;;  %v60_v30 = vld [vmem:[#allocation2 + $0x40] sm:$0xff]  ;;  %v107_v33 = vld [vmem:[#allocation2 + $0x1b8] sm:$0xff] }
  0x26   :  { %511 = vmatprep.subr.mxu1 %v111_v17  ;;  %477 = vmatpush3.msra.mxu0 %v63_v18  ;;  %v93_v27 = vld [vmem:[#allocation2 + $0x148] sm:$0xff]  ;;  %v92_v31 = vld [vmem:[#allocation2 + $0x140] sm:$0xff]  ;;  %v59_v34 = vld [vmem:[#allocation2 + $0x38] sm:$0xff] }
  0x27   :  { %512 = vmatpush3.msra.mxu1 %v95_v19  ;;  %478 = vmatprep.subr.mxu0 %v78_v20  ;;  %v91_v35 = vld [vmem:[#allocation2 + $0x138] sm:$0xff]  ;;  %v74_v36 = vld [vmem:[#allocation2 + $0xb0] sm:$0xff]  ;;  %v73_v40 = vld [vmem:[#allocation2 + $0xa8] sm:$0xff] }
  0x28   :  { %513 = vmatprep.subr.mxu1 %v110_v21  ;;  %479 = vmatpush3.msra.mxu0 %v62_v22  ;;  %v106_v37 = vld [vmem:[#allocation2 + $0x1b0] sm:$0xff]  ;;  %v105_v41 = vld [vmem:[#allocation2 + $0x1a8] sm:$0xff]  ;;  %v72_v44 = vld [vmem:[#allocation2 + $0xa0] sm:$0xff] }
  0x29   :  { %514 = vmatpush3.msra.mxu1 %v94_v23  ;;  %480 = vmatprep.subr.mxu0 %v77_v24  ;;  %v58_v38 = vld [vmem:[#allocation2 + $0x30] sm:$0xff]  ;;  %v57_v42 = vld [vmem:[#allocation2 + $0x28] sm:$0xff]  ;;  %v104_v45 = vld [vmem:[#allocation2 + $0x1a0] sm:$0xff] }
  0x2a   :  { %515 = vmatprep.subr.mxu1 %v109_v25  ;;  %481 = vmatpush3.msra.mxu0 %v61_v26  ;;  %v90_v39 = vld [vmem:[#allocation2 + $0x130] sm:$0xff]  ;;  %v89_v43 = vld [vmem:[#allocation2 + $0x128] sm:$0xff]  ;;  %v56_v46 = vld [vmem:[#allocation2 + $0x20] sm:$0xff] }
  0x2b   :  { %516 = vmatpush3.msra.mxu1 %v93_v27  ;;  %482 = vmatprep.subr.mxu0 %v76_v28  ;;  %v88_v47 = vld [vmem:[#allocation2 + $0x120] sm:$0xff]  ;;  %v71_v48 = vld [vmem:[#allocation2 + $0x98] sm:$0xff]  ;;  %v70_v52 = vld [vmem:[#allocation2 + $0x90] sm:$0xff] }
  0x2c   :  { %517 = vmatprep.subr.mxu1 %v108_v29  ;;  %483 = vmatpush3.msra.mxu0 %v60_v30  ;;  %v103_v49 = vld [vmem:[#allocation2 + $0x198] sm:$0xff]  ;;  %v102_v53 = vld [vmem:[#allocation2 + $0x190] sm:$0xff]  ;;  %v69_v56 = vld [vmem:[#allocation2 + $0x88] sm:$0xff] }
  0x2d   :  { %518 = vmatpush3.msra.mxu1 %v92_v31  ;;  %484 = vmatprep.subr.mxu0 %v75_v32  ;;  %v55_v50 = vld [vmem:[#allocation2 + $0x18] sm:$0xff]  ;;  %v54_v54 = vld [vmem:[#allocation2 + $0x10] sm:$0xff]  ;;  %v101_v57 = vld [vmem:[#allocation2 + $0x188] sm:$0xff] }
  0x2e   :  { %519 = vmatprep.subr.mxu1 %v107_v33  ;;  %485 = vmatpush3.msra.mxu0 %v59_v34  ;;  %v87_v51 = vld [vmem:[#allocation2 + $0x118] sm:$0xff]  ;;  %v86_v55 = vld [vmem:[#allocation2 + $0x110] sm:$0xff]  ;;  %v53_v58 = vld [vmem:[#allocation2 + $0x8] sm:$0xff] }
  0x2f   :  { %520 = vmatpush3.msra.mxu1 %v91_v35  ;;  %486 = vmatprep.subr.mxu0 %v74_v36  ;;  %v85_v59 = vld [vmem:[#allocation2 + $0x108] sm:$0xff]  ;;  %v68_v60 = vld [vmem:[#allocation2 + $0x80] sm:$0xff]  ;;  %v48_v1 = vld [vmem:[%s799_s0 + $0x18] sm:$0xff] }
  0x30   :  { %521 = vmatprep.subr.mxu1 %v106_v37  ;;  %487 = vmatpush3.msra.mxu0 %v58_v38  ;;  %v100_v61 = vld [vmem:[#allocation2 + $0x180] sm:$0xff]  ;;  %v46_v63 = vld [vmem:[%s799_s0 + $0x8] sm:$0xff]  ;;  %v47_v3 = vld [vmem:[%s799_s0 + $0x10] sm:$0xff] }
  0x31   :  { %522 = vmatpush3.msra.mxu1 %v90_v39  ;;  %488 = vmatprep.subr.mxu0 %v73_v40  ;;  %v52_v62 = vld [vmem:[#allocation2] sm:$0xff]  ;;  %v276_v4 = vld [vmem:[#allocation4 + $0x78] sm:$0xff]  ;;  %v275_v6 = vld [vmem:[#allocation4 + $0x70] sm:$0xff] }
  0x32   :  { %523 = vmatprep.subr.mxu1 %v105_v41  ;;  %489 = vmatpush3.msra.mxu0 %v57_v42  ;;  %v84_v0 = vld [vmem:[#allocation2 + $0x100] sm:$0xff]  ;;  %v274_v7 = vld [vmem:[#allocation4 + $0x68] sm:$0xff]  ;;  %v272_v9 = vld [vmem:[#allocation4 + $0x58] sm:$0xff] }
  0x33   :  { %524 = vmatpush3.msra.mxu1 %v89_v43  ;;  %490 = vmatprep.subr.mxu0 %v72_v44  ;;  %v45_v2 = vld [vmem:[%s799_s0] sm:$0xff]  ;;  %v271_v10 = vld [vmem:[#allocation4 + $0x50] sm:$0xff]  ;;  %v270_v11 = vld [vmem:[#allocation4 + $0x48] sm:$0xff] }
  0x34   :  { %525 = vmatprep.subr.mxu1 %v104_v45  ;;  %491 = vmatpush3.msra.mxu0 %v56_v46  ;;  %v273_v8 = vld [vmem:[#allocation4 + $0x60] sm:$0xff]  ;;  %v268_v13 = vld [vmem:[#allocation4 + $0x38] sm:$0xff]  ;;  %v267_v14 = vld [vmem:[#allocation4 + $0x30] sm:$0xff] }
  0x35   :  { %526 = vmatpush3.msra.mxu1 %v88_v47  ;;  %492 = vmatprep.subr.mxu0 %v71_v48  ;;  %v269_v12 = vld [vmem:[#allocation4 + $0x40] sm:$0xff]  ;;  %v266_v15 = vld [vmem:[#allocation4 + $0x28] sm:$0xff]  ;;  %v264_v17 = vld [vmem:[#allocation4 + $0x18] sm:$0xff] }
  0x36   :  { %527 = vmatprep.subr.mxu1 %v103_v49  ;;  %493 = vmatpush3.msra.mxu0 %v55_v50  ;;  %v265_v16 = vld [vmem:[#allocation4 + $0x20] sm:$0xff]  ;;  %v263_v18 = vld [vmem:[#allocation4 + $0x10] sm:$0xff]  ;;  %v262_v19 = vld [vmem:[#allocation4 + $0x8] sm:$0xff] }
  0x37   :  { %528 = vmatpush3.msra.mxu1 %v87_v51  ;;  %494 = vmatprep.subr.mxu0 %v70_v52  ;;  %v261_v20 = vld [vmem:[#allocation4] sm:$0xff]  ;;  %v367_v21 = vld [vmem:[#allocation4 + $0xf8] sm:$0xff]  ;;  %v366_v22 = vld [vmem:[#allocation4 + $0xf0] sm:$0xff]  ;;  %v442_v52 = vlaneseq }
  0x38   :  { %529 = vmatprep.subr.mxu1 %v102_v53  ;;  %495 = vmatpush3.msra.mxu0 %v54_v54  ;;  %v365_v23 = vld [vmem:[#allocation4 + $0xe8] sm:$0xff]  ;;  %v364_v24 = vld [vmem:[#allocation4 + $0xe0] sm:$0xff]  ;;  %v363_v25 = vld [vmem:[#allocation4 + $0xd8] sm:$0xff] }
  0x39   :  { %530 = vmatpush3.msra.mxu1 %v86_v55  ;;  %496 = vmatprep.subr.mxu0 %v69_v56  ;;  %v362_v26 = vld [vmem:[#allocation4 + $0xd0] sm:$0xff]  ;;  %v361_v27 = vld [vmem:[#allocation4 + $0xc8] sm:$0xff]  ;;  %v360_v28 = vld [vmem:[#allocation4 + $0xc0] sm:$0xff]  ;;  %v443_v53 = vand.u32 127, %v442_v52 }
  0x3a   :  { %531 = vmatprep.subr.mxu1 %v101_v57  ;;  %497 = vmatpush3.msra.mxu0 %v53_v58  ;;  %v359_v29 = vld [vmem:[#allocation4 + $0xb8] sm:$0xff]  ;;  %v358_v30 = vld [vmem:[#allocation4 + $0xb0] sm:$0xff]  ;;  %v357_v31 = vld [vmem:[#allocation4 + $0xa8] sm:$0xff] }
  0x3b   :  { %532 = vmatpush3.msra.mxu1 %v85_v59  ;;  %498 = vmatprep.subr.mxu0 %v68_v60  ;;  %v356_v32 = vld [vmem:[#allocation4 + $0xa0] sm:$0xff]  ;;  %v355_v33 = vld [vmem:[#allocation4 + $0x98] sm:$0xff]  ;;  %v354_v44 = vld [vmem:[#allocation4 + $0x90] sm:$0xff]  ;;  %vm444_vm1 = vcmp.ge.s32.totalorder %v443_v53, 4  ;;  %vm445_vm2 = vcmp.lt.s32.totalorder %v443_v53, 8 }
  0x3c   :  { %533 = vmatprep.subr.mxu1 %v100_v61  ;;  %499 = vmatpush3.msra.mxu0 %v52_v62  ;;  %v465_v36 = vld [vmem:[%s802_s3] ss:$0 sm:$0xff]  ;;  %v353_v45 = vld [vmem:[#allocation4 + $0x88] sm:$0xff]  ;;  %v466_v47 = vld [vmem:[%s802_s3 + $0x1] ss:$0 sm:$0xff] }
  0x3d   :  { %184 = vmatprep.mubr.f32.mxu0 %v46_v63  ;;  %534 = vmatpush3.msra.mxu1 %v84_v0  ;;  %v352_v46 = vld [vmem:[#allocation4 + $0x80] sm:$0xff]  ;;  %vm788_vm3 = vmand %vm444_vm1, %vm445_vm2 }
  0x3e   :  { %254 = vmatprep.mubr.f32.mxu1 %v48_v1  ;;  %185 = vmatmul.mubr.f32.vlgmr.msra.gmra.mxu0 %v45_v2  ;;  %v467_v54 = vld [vmem:[%s802_s3 + $0x2] ss:$0 sm:$0xff] }
  0x3f   :  { %255 = vmatmul.mubr.f32.vlgmr.msra.gmra.mxu1 %v47_v3  ;;  %572 = vmatprep.subr.mxu0 %v700_v5 }
  0x40   :  { %607 = vmatprep.subr.mxu1 %v700_v5  ;;  %573 = vmatpush3.msra.mxu0 %v276_v4 }
  0x41   :  { %574 = vmatprep.subr.mxu0 %v700_v5  ;;  %604 = vmatprep.mubr.msk.f32.mxu0 %vm701_vm0, %v700_v5 }
  0x42   :  { %575 = vmatpush3.msra.mxu0 %v275_v6  ;;  %639 = vmatprep.mubr.msk.f32.mxu1 %vm701_vm0, %v700_v5 }
  0x43   :  { %576 = vmatprep.subr.mxu0 %v700_v5  ;;  %608 = vmatpush3.msra.mxu1 %v367_v21 }
  0x44   :  { %577 = vmatpush3.msra.mxu0 %v274_v7  ;;  %609 = vmatprep.subr.mxu1 %v700_v5 }
  0x45   :  { %578 = vmatprep.subr.mxu0 %v700_v5  ;;  %610 = vmatpush3.msra.mxu1 %v366_v22 }
  0x46   :  { %579 = vmatpush3.msra.mxu0 %v273_v8  ;;  %611 = vmatprep.subr.mxu1 %v700_v5 }
  0x47   :  { %580 = vmatprep.subr.mxu0 %v700_v5  ;;  %612 = vmatpush3.msra.mxu1 %v365_v23 }
  0x48   :  { %581 = vmatpush3.msra.mxu0 %v272_v9  ;;  %613 = vmatprep.subr.mxu1 %v700_v5 }
  0x49   :  { %582 = vmatprep.subr.mxu0 %v700_v5  ;;  %614 = vmatpush3.msra.mxu1 %v364_v24 }
  0x4a   :  { %583 = vmatpush3.msra.mxu0 %v271_v10  ;;  %615 = vmatprep.subr.mxu1 %v700_v5 }
  0x4b   :  { %584 = vmatprep.subr.mxu0 %v700_v5  ;;  %616 = vmatpush3.msra.mxu1 %v363_v25 }
  0x4c   :  { %585 = vmatpush3.msra.mxu0 %v270_v11  ;;  %617 = vmatprep.subr.mxu1 %v700_v5 }
  0x4d   :  { %586 = vmatprep.subr.mxu0 %v700_v5  ;;  %618 = vmatpush3.msra.mxu1 %v362_v26 }
  0x4e   :  { %587 = vmatpush3.msra.mxu0 %v269_v12  ;;  %619 = vmatprep.subr.mxu1 %v700_v5 }
  0x4f   :  { %588 = vmatprep.subr.mxu0 %v700_v5  ;;  %620 = vmatpush3.msra.mxu1 %v361_v27 }
  0x50   :  { %589 = vmatpush3.msra.mxu0 %v268_v13  ;;  %621 = vmatprep.subr.mxu1 %v700_v5 }
  0x51   :  { %590 = vmatprep.subr.mxu0 %v700_v5  ;;  %622 = vmatpush3.msra.mxu1 %v360_v28 }
  0x52   :  { %591 = vmatpush3.msra.mxu0 %v267_v14  ;;  %623 = vmatprep.subr.mxu1 %v700_v5 }
  0x53   :  { %592 = vmatprep.subr.mxu0 %v700_v5  ;;  %624 = vmatpush3.msra.mxu1 %v359_v29 }
  0x54   :  { %593 = vmatpush3.msra.mxu0 %v266_v15  ;;  %625 = vmatprep.subr.mxu1 %v700_v5 }
  0x55   :  { %594 = vmatprep.subr.mxu0 %v700_v5  ;;  %626 = vmatpush3.msra.mxu1 %v358_v30 }
  0x56   :  { %595 = vmatpush3.msra.mxu0 %v265_v16  ;;  %627 = vmatprep.subr.mxu1 %v700_v5 }
  0x57   :  { %596 = vmatprep.subr.mxu0 %v700_v5  ;;  %628 = vmatpush3.msra.mxu1 %v357_v31 }
  0x58   :  { %597 = vmatpush3.msra.mxu0 %v264_v17  ;;  %629 = vmatprep.subr.mxu1 %v700_v5 }
  0x59   :  { %598 = vmatprep.subr.mxu0 %v700_v5  ;;  %630 = vmatpush3.msra.mxu1 %v356_v32 }
  0x5a   :  { %599 = vmatpush3.msra.mxu0 %v263_v18  ;;  %631 = vmatprep.subr.mxu1 %v700_v5 }
  0x5b   :  { %600 = vmatprep.subr.mxu0 %v700_v5  ;;  %632 = vmatpush3.msra.mxu1 %v355_v33 }
  0x5c   :  { %601 = vmatpush3.msra.mxu0 %v262_v19  ;;  %633 = vmatprep.subr.mxu1 %v700_v5 }
  0x5d   :  { %602 = vmatprep.subr.mxu0 %v700_v5  ;;  %634 = vmatpush3.msra.mxu1 %v354_v44 }
  0x5e   :  { %603 = vmatpush3.msra.mxu0 %v261_v20  ;;  %635 = vmatprep.subr.mxu1 %v700_v5 }
  0x5f   :  { %636 = vmatpush3.msra.mxu1 %v353_v45 }
  0x60   :  { %637 = vmatprep.subr.mxu1 %v700_v5 }
  0x61   :  { %638 = vmatpush3.msra.mxu1 %v352_v46 }
  0xfe   :  { %v500_v34 = vpop.f32.mrf.mxu0 }
  0xff   :  { %v535_v35 = vpop.f32.mrf.mxu1 }
 0x100   :  { %v501_v37 = vpop.f32.mrf.mxu0 }
 0x101   :  { %v536_v38 = vpop.f32.mrf.mxu1  ;;  %v502_v39 = vadd.f32 %v501_v37, %v500_v34 }
 0x102   :  { %v537_v41 = vadd.f32 %v536_v38, %v535_v35 }
 0x103   :  { %v187_v40 = vadd.f32 %v502_v39, %v465_v36 }
 0x105   :  { %v257_v42 = vadd.f32 %v537_v41, %v187_v40 }
 0x107   :  { %v260_v43 = vmax.f32 %v257_v42, 0.0 }
 0x109   :  { %605 = vmatmul.mubr.f32.vlgmr.msra.gmra.mxu0 %v260_v43 }
 0x1c9   :  { %v347_v48 = vpop.f32.mrf.mxu0 }
 0x1ca   :  { %v348_v49 = vadd.f32 %v466_v47, %v347_v48 }
 0x1cb   :  { %v606_v50 = vpop.f32.mrf.mxu0 }
 0x1cc   :  { %v351_v51 = vmax.f32 %v348_v49, 0.0 }
 0x1ce   :  { %640 = vmatmul.mubr.f32.vlgmr.msra.gmra.mxu1 %v351_v51 }
 0x28e   :  { %v438_v55 = vpop.f32.mrf.mxu1 }
 0x28f   :  { %v439_v57 = vadd.f32 %v467_v54, %v438_v55 }
 0x290   :  { %v641_v58 = vpop.f32.mrf.mxu1 }
 0x291   :  { %v447_v59 = vsel %vm788_vm3, %v439_v57, -inf }
 0x292   :  { %448 = vmax.xlane.f32.xlu0 %v447_v59 }
 0x31b   :  { %v449_v60 = vpop.xlane.xlu0 %448 }
 0x31c   :  { %v450_v61 = vsub.f32 %v447_v59, %v449_v60 }
 0x31e   :  { %v451_v62 = vmul.f32 1.442695, %v450_v61 }
 0x320   :  { %648 = vpow2.f32 %v451_v62 }
 0x32d   :  { %v649_v63 = vpop.eup %648 }
 0x32e   :  { %453 = vadd.xlane.f32.xlu0 %v649_v63 }
 0x3b7   :  { %v454_v0 = vpop.xlane.xlu0 %453 }
 0x3b8   :  { %650 = vrcp.f32 %v454_v0 }
 0x3c5   :  { %v651_v1 = vpop.eup %650 }
 0x3c6   :  { %v456_v2 = vmul.f32 %v651_v1, %v649_v63 }
 0x3c8   :  { %v457_v3 = vsel %vm788_vm3, %v456_v2, %v439_v57 }
 0x3c9   :  { %458 = vst [vmem:[%s803_s4] sm:$0xff] %v457_v3 }
 0x3ca   :  { %463 = vsyncpa [#allocation3], 1 }
 0x3cb   :  { %464 = vsyncpa [#allocation5], 1 }

</bundles_post_ra>
